<compile_context>
chip_gen: v7x
topology: tpu7x:2x2x1
jax: 0.10.0
libtpu: 0.0.40
codegen_flags: <defaults>
</compile_context>

<pallas_src>
import math

import jax
import jax.numpy as jnp
from jax.experimental import pallas as pl
from jax.experimental.pallas import tpu as pltpu

TAB_DIM = 12 * 8 * 8          # 768 (= 6 * 128 lanes, no lane padding)
MISC_DIM = 8
IN_DIM = TAB_DIM + MISC_DIM   # 776
K1 = 32
K2 = 8
NEG_SLOPE = 0.01              # torch.nn.LeakyReLU default


def _round_up(n, m):
    return ((n + m - 1) // m) * m


def _leaky_relu(x):
    return jnp.where(x > 0, x, NEG_SLOPE * x)


def nnue_kernel(xt_ref, xm_ref, w1a_ref, w1b_ref, b1_ref, w2t_ref, b2_ref,
                w3_ref, o_ref):
    # xt: (tm, 768), xm: (tm, 8).  w1a/w1b stored (in, out) and pre-cast to the
    # layer-1 compute dtype; w2t is (8, 32) (torch layout), b2 is (8, 1),
    # w3 is (1, 8).  Output block is lane-dense: (1, tm).
    cd = w1a_ref.dtype
    xt = xt_ref[...].astype(cd)
    xm = xm_ref[...].astype(cd)

    # Layer 1: split-K matmul (768 + 8 contraction), f32 accumulation on MXU.
    h1 = jnp.dot(xt, w1a_ref[...], preferred_element_type=jnp.float32)
    h1 = h1 + jnp.dot(xm, w1b_ref[...], preferred_element_type=jnp.float32)
    h1 = _leaky_relu(h1 + b1_ref[...])                       # (tm, 32) f32

    # Lane-dense epilogue: one XLU transpose, then dense-N MXU matmuls.
    h1t = h1.T                                               # (32, tm)
    h2t = jnp.dot(w2t_ref[...], h1t, preferred_element_type=jnp.float32)
    h2t = _leaky_relu(h2t + b2_ref[...])                     # (8, tm)
    o_ref[...] = jnp.dot(w3_ref[...], h2t,
                         preferred_element_type=jnp.float32)  # (1, tm)


def nnue_forward(tables, misc_features, params, *, tm=2048,
                 layer1_dtype=jnp.bfloat16):
    """tables: (B, 12, 8, 8), misc_features: (B, 8) -> (B, 1) f32."""
    w1a, w1b, b1, w2t, b2, w3 = params
    B = tables.shape[0]
    xt = tables.reshape(B, TAB_DIM)
    xm = misc_features

    # Pre-cast the tiny layer-1 weights once (avoids a per-tile VPU cast).
    w1a = w1a.astype(layer1_dtype)
    w1b = w1b.astype(layer1_dtype)

    # ---- Batch-tile selection ----
    # Multiple of 128 so the lane-dense (1, tm) output block is aligned; cap at
    # ~half the batch so the grid has >=2 steps (v7x dual-TC sharding).
    tm = max(128, (tm // 128) * 128)
    tm = min(tm, _round_up(pl.cdiv(B, 2), 128))
    if pl.cdiv(B, tm) == 1:
        # Tiny batch: one tile covering the batch (sublane-aligned; tm == Bp so
        # the output block equals the full array and needs no 128 alignment).
        tm = _round_up(B, 8)
    num_tiles = pl.cdiv(B, tm)
    Bp = num_tiles * tm

    flops = 2 * B * (TAB_DIM * K1 + MISC_DIM * K1 + K1 * K2 + K2)
    bytes_accessed = int(
        B * TAB_DIM * xt.dtype.itemsize
        + B * MISC_DIM * xm.dtype.itemsize
        + sum(int(p.size) * p.dtype.itemsize
              for p in (w1a, w1b, b1, w2t, b2, w3))
        + Bp * 4)

    out = pl.pallas_call(
        nnue_kernel,
        out_shape=jax.ShapeDtypeStruct((1, Bp), jnp.float32),
        grid=(num_tiles,),
        in_specs=[
            pl.BlockSpec((tm, TAB_DIM), lambda i: (i, 0)),    # tables (tiled)
            pl.BlockSpec((tm, MISC_DIM), lambda i: (i, 0)),   # misc   (tiled)
            pl.BlockSpec((TAB_DIM, K1), lambda i: (0, 0)),    # w1a    (resident)
            pl.BlockSpec((MISC_DIM, K1), lambda i: (0, 0)),   # w1b    (resident)
            pl.BlockSpec((1, K1), lambda i: (0, 0)),          # b1
            pl.BlockSpec((K2, K1), lambda i: (0, 0)),         # w2t
            pl.BlockSpec((K2, 1), lambda i: (0, 0)),          # b2 (column)
            pl.BlockSpec((1, K2), lambda i: (0, 0)),          # w3 (row)
        ],
        out_specs=pl.BlockSpec((1, tm), lambda i: (0, i)),    # lane-dense output
        compiler_params=pltpu.CompilerParams(
            dimension_semantics=("parallel",),
            vmem_limit_bytes=40 * 1024 * 1024,
        ),
        cost_estimate=pl.CostEstimate(
            flops=flops, transcendentals=0, bytes_accessed=bytes_accessed),
    )(xt, xm, w1a, w1b, b1, w2t, b2, w3)

    # Ragged tail rows (computed on undefined padded data) are discarded here.
    return out.reshape(Bp, 1)[:B]


def init_params(key):
    """Xavier-normal weights, zero biases — matches the torch init.
    W1 is stored (in, out) and split into (768,32) + (8,32); W2 keeps the torch
    (8,32) layout; W3 is a (1,8) row; b2 is an (8,1) column."""
    k1, k2, k3 = jax.random.split(key, 3)

    def xavier(k, fan_in, fan_out, shape):
        std = math.sqrt(2.0 / (fan_in + fan_out))
        return (std * jax.random.normal(k, shape)).astype(jnp.float32)

    w1 = xavier(k1, IN_DIM, K1, (IN_DIM, K1))
    w1a, w1b = w1[:TAB_DIM], w1[TAB_DIM:]
    b1 = jnp.zeros((1, K1), jnp.float32)
    w2t = xavier(k2, K1, K2, (K2, K1))
    b2 = jnp.zeros((K2, 1), jnp.float32)
    w3 = xavier(k3, K2, 1, (1, K2))
    return (w1a, w1b, b1, w2t, b2, w3)


def reference_forward(tables, misc_features, params):
    """Pure-JAX f32 reference for the correctness check."""
    w1a, w1b, b1, w2t, b2, w3 = params
    B = tables.shape[0]
    xt = tables.reshape(B, TAB_DIM)
    h1 = _leaky_relu(xt @ w1a + misc_features @ w1b + b1)
    h2 = _leaky_relu(h1 @ w2t.T + b2.T)
    return h2 @ w3.T


if __name__ == "__main__":
    key = jax.random.PRNGKey(0)
    k_tab, k_misc, k_par = jax.random.split(key, 3)

    params = init_params(k_par)

    # Small deterministic case (single tile).
    B = 2
    tables = jax.random.normal(k_tab, (B, 12, 8, 8), dtype=jnp.float32)
    misc = jax.random.normal(k_misc, (B, 8), dtype=jnp.float32)
    ref = reference_forward(tables, misc, params)

    # Exact f32 path.
    out_f32 = jax.block_until_ready(
        nnue_forward(tables, misc, params, layer1_dtype=jnp.float32))
    assert out_f32.shape == (B, 1)
    assert jnp.allclose(out_f32, ref, atol=1e-4, rtol=1e-4)

    # Default fast path: bf16 layer-1 operands, f32 accumulation.
    out = jax.block_until_ready(nnue_forward(tables, misc, params))
    assert out.shape == (B, 1)
    assert jnp.allclose(out, ref, atol=5e-2, rtol=5e-2)

    # Multi-tile path with a ragged final input block (no wrapper padding).
    B2 = 300
    k_tab2, k_misc2 = jax.random.split(k_tab)
    tables2 = jax.random.normal(k_tab2, (B2, 12, 8, 8), dtype=jnp.float32)
    misc2 = jax.random.normal(k_misc2, (B2, 8), dtype=jnp.float32)
    ref2 = reference_forward(tables2, misc2, params)
    out2 = jax.block_until_ready(
        nnue_forward(tables2, misc2, params, layer1_dtype=jnp.float32))
    assert out2.shape == (B2, 1)
    assert jnp.allclose(out2, ref2, atol=1e-4, rtol=1e-4)

    print("KERNEL_OK")
</pallas_src>

<mosaic_0001>
module attributes {stable_mosaic.version = 11 : i64} {
  func.func @nnue_kernel(%arg0: i32, %arg1: memref<8x768xf32, #tpu.memory_space<vmem>>, %arg2: memref<8x8xf32, #tpu.memory_space<vmem>>, %arg3: memref<768x32xf32, #tpu.memory_space<vmem>>, %arg4: memref<8x32xf32, #tpu.memory_space<vmem>>, %arg5: memref<1x32xf32, #tpu.memory_space<vmem>>, %arg6: memref<8x32xf32, #tpu.memory_space<vmem>>, %arg7: memref<8x1xf32, #tpu.memory_space<vmem>>, %arg8: memref<1x8xf32, #tpu.memory_space<vmem>>, %arg9: memref<1x8xf32, #tpu.memory_space<vmem>>) attributes {dimension_semantics = [#tpu.dimension_semantics<parallel>], iteration_bounds = array<i64: 1>, scalar_prefetch = 0 : i64, scratch_operands = 0 : i64, tpu.core_type = #tpu.core_type<tc>, window_params = [{transform_indices = @transform_0, window_bounds = array<i64: 8, 768>}, {transform_indices = @transform_1, window_bounds = array<i64: 8, 8>}, {pipeline_mode = #tpu.pipeline_mode<synchronous>, transform_indices = @transform_2, window_bounds = array<i64: 768, 32>}, {pipeline_mode = #tpu.pipeline_mode<synchronous>, transform_indices = @transform_3, window_bounds = array<i64: 8, 32>}, {pipeline_mode = #tpu.pipeline_mode<synchronous>, transform_indices = @transform_4, window_bounds = array<i64: 1, 32>}, {pipeline_mode = #tpu.pipeline_mode<synchronous>, transform_indices = @transform_5, window_bounds = array<i64: 8, 32>}, {pipeline_mode = #tpu.pipeline_mode<synchronous>, transform_indices = @transform_6, window_bounds = array<i64: 8, 1>}, {pipeline_mode = #tpu.pipeline_mode<synchronous>, transform_indices = @transform_7, window_bounds = array<i64: 1, 8>}, {transform_indices = @transform_8, window_bounds = array<i64: 1, 8>}]} {
    %c0 = arith.constant 0 : index
    %c0_0 = arith.constant 0 : index
    %0 = vector.load %arg1[%c0, %c0_0] : memref<8x768xf32, #tpu.memory_space<vmem>>, vector<8x768xf32>
    %c0_1 = arith.constant 0 : index
    %c0_2 = arith.constant 0 : index
    %1 = vector.load %arg2[%c0_1, %c0_2] : memref<8x8xf32, #tpu.memory_space<vmem>>, vector<8x8xf32>
    %c0_3 = arith.constant 0 : index
    %c0_4 = arith.constant 0 : index
    %2 = vector.load %arg3[%c0_3, %c0_4] : memref<768x32xf32, #tpu.memory_space<vmem>>, vector<768x32xf32>
    %cst = arith.constant dense<0.000000e+00> : vector<8x32xf32>
    %3 = tpu.matmul %0, %2, %cst {dimension_numbers = #tpu.dot_dimension_numbers<[1], [0], [0], [1], [0, 0, 1, 1], [], []>} : vector<8x768xf32>, vector<768x32xf32>, vector<8x32xf32> -> vector<8x32xf32>
    %c0_5 = arith.constant 0 : index
    %c0_6 = arith.constant 0 : index
    %4 = vector.load %arg4[%c0_5, %c0_6] : memref<8x32xf32, #tpu.memory_space<vmem>>, vector<8x32xf32>
    %cst_7 = arith.constant dense<0.000000e+00> : vector<8x32xf32>
    %5 = tpu.matmul %1, %4, %cst_7 {dimension_numbers = #tpu.dot_dimension_numbers<[1], [0], [0], [1], [0, 0, 1, 1], [], []>} : vector<8x8xf32>, vector<8x32xf32>, vector<8x32xf32> -> vector<8x32xf32>
    %6 = arith.addf %3, %5 : vector<8x32xf32>
    %c0_8 = arith.constant 0 : index
    %c0_9 = arith.constant 0 : index
    %7 = vector.load %arg5[%c0_8, %c0_9] : memref<1x32xf32, #tpu.memory_space<vmem>>, vector<1x32xf32>
    %8 = vector.broadcast %7 : vector<1x32xf32> to vector<8x32xf32>
    %9 = arith.addf %6, %8 : vector<8x32xf32>
    %cst_10 = arith.constant 0.000000e+00 : f32
    %10 = vector.broadcast %cst_10 : f32 to vector<8x32xf32>
    %11 = arith.cmpf ogt, %9, %10 : vector<8x32xf32>
    %cst_11 = arith.constant 0.00999999977 : f32
    %12 = vector.broadcast %cst_11 : f32 to vector<8x32xf32>
    %13 = arith.mulf %12, %9 : vector<8x32xf32>
    %14 = arith.select %11, %9, %13 : vector<8x32xi1>, vector<8x32xf32>
    %15 = tpu.transpose %14, [1, 0] : vector<8x32xf32> -> vector<32x8xf32>
    %c0_12 = arith.constant 0 : index
    %c0_13 = arith.constant 0 : index
    %16 = vector.load %arg6[%c0_12, %c0_13] : memref<8x32xf32, #tpu.memory_space<vmem>>, vector<8x32xf32>
    %cst_14 = arith.constant dense<0.000000e+00> : vector<8x8xf32>
    %17 = tpu.matmul %16, %15, %cst_14 {dimension_numbers = #tpu.dot_dimension_numbers<[1], [0], [0], [1], [0, 0, 1, 1], [], []>} : vector<8x32xf32>, vector<32x8xf32>, vector<8x8xf32> -> vector<8x8xf32>
    %c0_15 = arith.constant 0 : index
    %c0_16 = arith.constant 0 : index
    %18 = vector.load %arg7[%c0_15, %c0_16] : memref<8x1xf32, #tpu.memory_space<vmem>>, vector<8x1xf32>
    %19 = vector.broadcast %18 : vector<8x1xf32> to vector<8x8xf32>
    %20 = arith.addf %17, %19 : vector<8x8xf32>
    %cst_17 = arith.constant 0.000000e+00 : f32
    %21 = vector.broadcast %cst_17 : f32 to vector<8x8xf32>
    %22 = arith.cmpf ogt, %20, %21 : vector<8x8xf32>
    %cst_18 = arith.constant 0.00999999977 : f32
    %23 = vector.broadcast %cst_18 : f32 to vector<8x8xf32>
    %24 = arith.mulf %23, %20 : vector<8x8xf32>
    %25 = arith.select %22, %20, %24 : vector<8x8xi1>, vector<8x8xf32>
    %c0_19 = arith.constant 0 : index
    %c0_20 = arith.constant 0 : index
    %26 = vector.load %arg8[%c0_19, %c0_20] : memref<1x8xf32, #tpu.memory_space<vmem>>, vector<1x8xf32>
    %cst_21 = arith.constant dense<0.000000e+00> : vector<1x8xf32>
    %27 = tpu.matmul %26, %25, %cst_21 {dimension_numbers = #tpu.dot_dimension_numbers<[1], [0], [0], [1], [0, 0, 1, 1], [], []>} : vector<1x8xf32>, vector<8x8xf32>, vector<1x8xf32> -> vector<1x8xf32>
    %c0_22 = arith.constant 0 : index
    %c0_23 = arith.constant 0 : index
    %28 = vector.load %arg9[%c0_22, %c0_23] : memref<1x8xf32, #tpu.memory_space<vmem>>, vector<1x8xf32>
    tpu.vector_store %arg9[%c0_22, %c0_23], %27 {strides = array<i32>} : memref<1x8xf32, #tpu.memory_space<vmem>>, vector<1x8xf32>,
    return
  }
  func.func @transform_0(%arg0: i32) -> (i32, i32) {
    %c0_i32 = arith.constant 0 : i32
    %c0_i32_0 = arith.constant 0 : i32
    return %arg0, %c0_i32 : i32, i32
  }
  func.func @transform_1(%arg0: i32) -> (i32, i32) {
    %c0_i32 = arith.constant 0 : i32
    %c0_i32_0 = arith.constant 0 : i32
    return %arg0, %c0_i32 : i32, i32
  }
  func.func @transform_2(%arg0: i32) -> (i32, i32) {
    %c0_i32 = arith.constant 0 : i32
    %c0_i32_0 = arith.constant 0 : i32
    %c0_i32_1 = arith.constant 0 : i32
    return %c0_i32, %c0_i32_0 : i32, i32
  }
  func.func @transform_3(%arg0: i32) -> (i32, i32) {
    %c0_i32 = arith.constant 0 : i32
    %c0_i32_0 = arith.constant 0 : i32
    %c0_i32_1 = arith.constant 0 : i32
    return %c0_i32, %c0_i32_0 : i32, i32
  }
  func.func @transform_4(%arg0: i32) -> (i32, i32) {
    %c0_i32 = arith.constant 0 : i32
    %c0_i32_0 = arith.constant 0 : i32
    %c0_i32_1 = arith.constant 0 : i32
    return %c0_i32, %c0_i32_0 : i32, i32
  }
  func.func @transform_5(%arg0: i32) -> (i32, i32) {
    %c0_i32 = arith.constant 0 : i32
    %c0_i32_0 = arith.constant 0 : i32
    %c0_i32_1 = arith.constant 0 : i32
    return %c0_i32, %c0_i32_0 : i32, i32
  }
  func.func @transform_6(%arg0: i32) -> (i32, i32) {
    %c0_i32 = arith.constant 0 : i32
    %c0_i32_0 = arith.constant 0 : i32
    %c0_i32_1 = arith.constant 0 : i32
    return %c0_i32, %c0_i32_0 : i32, i32
  }
  func.func @transform_7(%arg0: i32) -> (i32, i32) {
    %c0_i32 = arith.constant 0 : i32
    %c0_i32_0 = arith.constant 0 : i32
    %c0_i32_1 = arith.constant 0 : i32
    return %c0_i32, %c0_i32_0 : i32, i32
  }
  func.func @transform_8(%arg0: i32) -> (i32, i32) {
    %c0_i32 = arith.constant 0 : i32
    %c0_i32_0 = arith.constant 0 : i32
    return %c0_i32, %arg0 : i32, i32
  }
}

</mosaic_0001>

<bundles_post_ra>
// kernel: tpu_custom_call.1
= control target key start
LH: loop header
LB: loop body
LE: loop exit
PB: predicated region body
PF: predicated region fallthrough
CT: control target
= control target key end

     0   :  { %vm136_vm0 = vcmask 64512   ;;  %v941_v3 = vmov 0.0   ;;  %vm942_vm1 = vmmov 0   ;;  %v943_v53 = vmov 1983009808   ;;  %s1346_s0 = inlined_call_operand.vmem [shape: f32[2,768], index: 0, kind: input, shape index: {}]   ;;  %s1347_s1 = inlined_call_operand.vmem [shape: f32[2,8], index: 1, kind: input, shape index: {}]   ;;  %s1348_s2 = inlined_call_operand.vmem [shape: f32[768,32], index: 2, kind: input, shape index: {}]   ;;  %s1349_s3 = inlined_call_operand.vmem [shape: f32[8,32], index: 3, kind: input, shape index: {}]   ;;  %s1350_s4 = inlined_call_operand.vmem [shape: f32[1,32], index: 4, kind: input, shape index: {}]   ;;  %s1351_s5 = inlined_call_operand.vmem [shape: f32[8,32], index: 5, kind: input, shape index: {}]   ;;  %s1352_s6 = inlined_call_operand.vmem [shape: f32[8,1], index: 6, kind: input, shape index: {}]   ;;  %s1353_s7 = inlined_call_operand.vmem [shape: f32[1,8], index: 7, kind: input, shape index: {}]   ;;  %s1354_s8 = inlined_call_operand.hbm [shape: f32[1,8], index: 8, kind: output, shape index: {}]  }
   0x1   :  { %v55_v0 = vld [vmem:[%s1348_s2 + $0x80] sm:$0xff]  ;;  %v56_v1 = vld [vmem:[%s1348_s2 + $0x88] sm:$0xff]  ;;  %792 = vmatprep.subr.mxu0 %v941_v3  ;;  %794 = vmatprep.mubr.msk.f32.mxu0 %vm942_vm1, %v941_v3  ;;  %v57_v14 = vld [vmem:[%s1348_s2 + $0x90] sm:$0xff]  ;;  %v223_v54 = vunpack.c.l.s4 %v943_v53  ;;  %v225_v55 = vlaneseq }
   0x2   :  { %v135_v2 = vld [vmem:[%s1349_s3] sm:$0xff]  ;;  %v807_v4 = vpack.c.bf16 %v56_v1, %v55_v0  ;;  %v40_v6 = vld [vmem:[%s1348_s2 + $0x8] sm:$0xff]  ;;  %v58_v15 = vld [vmem:[%s1348_s2 + $0x98] sm:$0xff] }
   0x3   :  { %v39_v5 = vld [vmem:[%s1348_s2] sm:$0xff]  ;;  %793 = vmatpush3.msra.mxu0 %v135_v2  ;;  %v88_v9 = vld [vmem:[%s1348_s2 + $0x188] sm:$0xff]  ;;  %v811_v17 = vpack.c.bf16 %v58_v15, %v57_v14  ;;  %v41_v18 = vld [vmem:[%s1348_s2 + $0x10] sm:$0xff] }
   0x4   :  { %v87_v7 = vld [vmem:[%s1348_s2 + $0x180] sm:$0xff]  ;;  %v809_v8 = vpack.c.bf16 %v40_v6, %v39_v5  ;;  %808 = vmatprep.subr.bf16.mxu1 %v807_v4  ;;  %v72_v13 = vld [vmem:[%s1348_s2 + $0x108] sm:$0xff]  ;;  %v42_v19 = vld [vmem:[%s1348_s2 + $0x18] sm:$0xff]  ;;  %v224_v6 = vunpack.c.0.s8 %v223_v54 }
   0x5   :  { %v38_v10 = vld [vmem:[%s1347_s1] sm:$0xff]  ;;  %v839_v12 = vpack.c.bf16 %v88_v9, %v87_v7  ;;  %v89_v20 = vld [vmem:[%s1348_s2 + $0x190] sm:$0xff]  ;;  %v813_v21 = vpack.c.bf16 %v42_v19, %v41_v18  ;;  %v90_v22 = vld [vmem:[%s1348_s2 + $0x198] sm:$0xff]  ;;  %v226_v7 = vshrl.u32 %v225_v55, 7 }
   0x6   :  { %v71_v11 = vld [vmem:[%s1348_s2 + $0x100] sm:$0xff]  ;;  %795 = vmatmul.mubr.msk.f32.vlgmr.msra.gmra.mrb[0].mxu0 %vm136_vm0, %v38_v10  ;;  %810 = vmatpush3.bf16.msra.mxu1 %v809_v8  ;;  %v73_v23 = vld [vmem:[%s1348_s2 + $0x110] sm:$0xff]  ;;  %v74_v24 = vld [vmem:[%s1348_s2 + $0x118] sm:$0xff]  ;;  %v843_v25 = vpack.c.bf16 %v90_v22, %v89_v20 }
   0x7   :  { %v841_v16 = vpack.c.bf16 %v72_v13, %v71_v11  ;;  %840 = vmatprep.subr.bf16.mxu0 %v839_v12  ;;  %812 = vmatprep.subr.bf16.mxu1 %v811_v17  ;;  %v845_v26 = vpack.c.bf16 %v74_v24, %v73_v23  ;;  %v59_v27 = vld [vmem:[%s1348_s2 + $0xa0] sm:$0xff]  ;;  %v60_v28 = vld [vmem:[%s1348_s2 + $0xa8] sm:$0xff]  ;;  %v61_v38 = vld [vmem:[%s1348_s2 + $0xb0] sm:$0xff]  ;;  %v1166_v23 = vsub.s32 %v224_v6, %v226_v7 }
   0x8   :  { %v43_v29 = vld [vmem:[%s1348_s2 + $0x20] sm:$0xff]  ;;  %v815_v30 = vpack.c.bf16 %v60_v28, %v59_v27  ;;  %v44_v31 = vld [vmem:[%s1348_s2 + $0x28] sm:$0xff]  ;;  %v62_v39 = vld [vmem:[%s1348_s2 + $0xb8] sm:$0xff] }
   0x9   :  { %842 = vmatpush3.bf16.msra.mxu0 %v841_v16  ;;  %v91_v32 = vld [vmem:[%s1348_s2 + $0x1a0] sm:$0xff]  ;;  %v92_v33 = vld [vmem:[%s1348_s2 + $0x1a8] sm:$0xff]  ;;  %v817_v34 = vpack.c.bf16 %v44_v31, %v43_v29  ;;  %v45_v40 = vld [vmem:[%s1348_s2 + $0x30] sm:$0xff]  ;;  %v819_v43 = vpack.c.bf16 %v62_v39, %v61_v38 }
   0xa   :  { %814 = vmatpush3.bf16.msra.mxu1 %v813_v21  ;;  %844 = vmatprep.subr.bf16.mxu0 %v843_v25  ;;  %v847_v35 = vpack.c.bf16 %v92_v33, %v91_v32  ;;  %v75_v36 = vld [vmem:[%s1348_s2 + $0x120] sm:$0xff]  ;;  %v76_v37 = vld [vmem:[%s1348_s2 + $0x128] sm:$0xff]  ;;  %v46_v41 = vld [vmem:[%s1348_s2 + $0x38] sm:$0xff] }
   0xb   :  { %816 = vmatprep.subr.bf16.mxu1 %v815_v30  ;;  %v849_v42 = vpack.c.bf16 %v76_v37, %v75_v36  ;;  %v93_v44 = vld [vmem:[%s1348_s2 + $0x1b0] sm:$0xff]  ;;  %v94_v45 = vld [vmem:[%s1348_s2 + $0x1b8] sm:$0xff]  ;;  %v63_v49 = vld [vmem:[%s1348_s2 + $0xc0] sm:$0xff]  ;;  %v821_v51 = vpack.c.bf16 %v46_v41, %v45_v40 }
   0xc   :  { %v77_v46 = vld [vmem:[%s1348_s2 + $0x130] sm:$0xff]  ;;  %v851_v47 = vpack.c.bf16 %v94_v45, %v93_v44  ;;  %v78_v48 = vld [vmem:[%s1348_s2 + $0x138] sm:$0xff]  ;;  %v64_v50 = vld [vmem:[%s1348_s2 + $0xc8] sm:$0xff] }
   0xd   :  { %846 = vmatpush3.bf16.msra.mxu0 %v845_v26  ;;  %v95_v52 = vld [vmem:[%s1348_s2 + $0x1c0] sm:$0xff]  ;;  %v823_v56 = vpack.c.bf16 %v64_v50, %v63_v49  ;;  %v48_v58 = vld [vmem:[%s1348_s2 + $0x48] sm:$0xff]  ;;  %v853_v60 = vpack.c.bf16 %v78_v48, %v77_v46  ;;  %v65_v61 = vld [vmem:[%s1348_s2 + $0xd0] sm:$0xff] }
   0xe   :  { %848 = vmatprep.subr.bf16.mxu0 %v847_v35  ;;  %818 = vmatpush3.bf16.msra.mxu1 %v817_v34  ;;  %v47_v57 = vld [vmem:[%s1348_s2 + $0x40] sm:$0xff]  ;;  %v96_v59 = vld [vmem:[%s1348_s2 + $0x1c8] sm:$0xff]  ;;  %v66_v62 = vld [vmem:[%s1348_s2 + $0xd8] sm:$0xff] }
   0xf   :  { %820 = vmatprep.subr.bf16.mxu1 %v819_v43  ;;  %v855_v63 = vpack.c.bf16 %v96_v59, %v95_v52  ;;  %v79_v0 = vld [vmem:[%s1348_s2 + $0x140] sm:$0xff]  ;;  %v80_v1 = vld [vmem:[%s1348_s2 + $0x148] sm:$0xff]  ;;  %v825_v2 = vpack.c.bf16 %v48_v58, %v47_v57  ;;  %v97_v4 = vld [vmem:[%s1348_s2 + $0x1d0] sm:$0xff]  ;;  %v827_v8 = vpack.c.bf16 %v66_v62, %v65_v61 }
  0x10   :  { %v98_v5 = vld [vmem:[%s1348_s2 + $0x1d8] sm:$0xff]  ;;  %v49_v9 = vld [vmem:[%s1348_s2 + $0x50] sm:$0xff]  ;;  %v857_v11 = vpack.c.bf16 %v80_v1, %v79_v0  ;;  %v67_v13 = vld [vmem:[%s1348_s2 + $0xe0] sm:$0xff] }
  0x11   :  { %850 = vmatpush3.bf16.msra.mxu0 %v849_v42  ;;  %v50_v10 = vld [vmem:[%s1348_s2 + $0x58] sm:$0xff]  ;;  %v81_v12 = vld [vmem:[%s1348_s2 + $0x150] sm:$0xff]  ;;  %v68_v14 = vld [vmem:[%s1348_s2 + $0xe8] sm:$0xff]  ;;  %v859_v15 = vpack.c.bf16 %v98_v5, %v97_v4 }
  0x12   :  { %852 = vmatprep.subr.bf16.mxu0 %v851_v47  ;;  %822 = vmatpush3.bf16.msra.mxu1 %v821_v51  ;;  %v82_v16 = vld [vmem:[%s1348_s2 + $0x158] sm:$0xff]  ;;  %v51_v17 = vld [vmem:[%s1348_s2 + $0x60] sm:$0xff]  ;;  %v52_v18 = vld [vmem:[%s1348_s2 + $0x68] sm:$0xff]  ;;  %v829_v19 = vpack.c.bf16 %v50_v10, %v49_v9  ;;  %v831_v24 = vpack.c.bf16 %v68_v14, %v67_v13 }
  0x13   :  { %824 = vmatprep.subr.bf16.mxu1 %v823_v56  ;;  %v99_v20 = vld [vmem:[%s1348_s2 + $0x1e0] sm:$0xff]  ;;  %v100_v21 = vld [vmem:[%s1348_s2 + $0x1e8] sm:$0xff]  ;;  %v69_v22 = vld [vmem:[%s1348_s2 + $0xf0] sm:$0xff]  ;;  %v861_v28 = vpack.c.bf16 %v82_v16, %v81_v12  ;;  %v833_v34 = vpack.c.bf16 %v52_v18, %v51_v17 }
  0x14   :  { %v83_v25 = vld [vmem:[%s1348_s2 + $0x160] sm:$0xff]  ;;  %v84_v26 = vld [vmem:[%s1348_s2 + $0x168] sm:$0xff]  ;;  %v70_v27 = vld [vmem:[%s1348_s2 + $0xf8] sm:$0xff]  ;;  %v863_v30 = vpack.c.bf16 %v100_v21, %v99_v20 }
  0x15   :  { %854 = vmatpush3.bf16.msra.mxu0 %v853_v60  ;;  %v909_v29 = vld [vmem:[%s1346_s0] ss:$12 sps:$4 sm:$0xff]   ;;  %v911_v31 = vld [vmem:[%s1346_s0 + $0x4] ss:$12 sps:$4 sm:$0xff]   ;;  %v914_v33 = vld [vmem:[%s1346_s0 + $0x1c] ss:$12 sps:$4 sm:$0xff]   ;;  %v835_v38 = vpack.c.bf16 %v70_v27, %v69_v22  ;;  %v865_v44 = vpack.c.bf16 %v84_v26, %v83_v25 }
  0x16   :  { %856 = vmatprep.subr.bf16.mxu0 %v855_v63  ;;  %826 = vmatpush3.bf16.msra.mxu1 %v825_v2  ;;  %v912_v32 = vld [vmem:[%s1346_s0 + $0x18] ss:$12 sps:$4 sm:$0xff]   ;;  %v101_v35 = vld [vmem:[%s1348_s2 + $0x1f0] sm:$0xff]  ;;  %v228_v37 = vrot.slane %v909_v29, %v1166_v23  ;;  %v235_v42 = vrot.slane %v911_v31, %v1166_v23  ;;  %v249_v43 = vrot.slane %v914_v33, %v1166_v23  ;;  %v120_v46 = vld [vmem:[%s1348_s2 + $0x288] sm:$0xff] }
  0x17   :  { %828 = vmatprep.subr.bf16.mxu1 %v827_v8  ;;  %v102_v36 = vld [vmem:[%s1348_s2 + $0x1f8] sm:$0xff]  ;;  %v53_v39 = vld [vmem:[%s1348_s2 + $0x70] sm:$0xff]  ;;  %v242_v41 = vrot.slane %v912_v32, %v1166_v23  ;;  %v119_v45 = vld [vmem:[%s1348_s2 + $0x280] sm:$0xff] }
  0x18   :  { %v54_v40 = vld [vmem:[%s1348_s2 + $0x78] sm:$0xff]  ;;  %v867_v47 = vpack.c.bf16 %v102_v36, %v101_v35  ;;  %v85_v49 = vld [vmem:[%s1348_s2 + $0x170] sm:$0xff]  ;;  %v253_v51 = vcombine.high %v235_v42, %v249_v43  ;;  %v871_v53 = vpack.c.bf16 %v120_v46, %v119_v45  ;;  %v103_v54 = vld [vmem:[%s1348_s2 + $0x200] sm:$0xff]  ;;  %v252_v61 = vcombine.low %v235_v42, %v249_v43 }
  0x19   :  { %858 = vmatpush3.bf16.msra.mxu0 %v857_v11  ;;  %v251_v48 = vcombine.high %v228_v37, %v242_v41  ;;  %v86_v50 = vld [vmem:[%s1348_s2 + $0x178] sm:$0xff]  ;;  %v837_v52 = vpack.c.bf16 %v54_v40, %v53_v39  ;;  %v104_v55 = vld [vmem:[%s1348_s2 + $0x208] sm:$0xff]  ;;  %v121_v57 = vld [vmem:[%s1348_s2 + $0x290] sm:$0xff]  ;;  %v250_v59 = vcombine.low %v228_v37, %v242_v41 }
  0x1a   :  { %860 = vmatprep.subr.bf16.mxu0 %v859_v15  ;;  %830 = vmatpush3.bf16.msra.mxu1 %v829_v19  ;;  %v869_v56 = vpack.c.bf16 %v86_v50, %v85_v49  ;;  %v122_v58 = vld [vmem:[%s1348_s2 + $0x298] sm:$0xff]  ;;  %v873_v60 = vpack.c.bf16 %v104_v55, %v103_v54  ;;  %v105_v63 = vld [vmem:[%s1348_s2 + $0x210] sm:$0xff]  ;;  %v123_v1 = vld [vmem:[%s1348_s2 + $0x2a0] sm:$0xff] }
  0x1b   :  { %832 = vmatprep.subr.bf16.mxu1 %v831_v24  ;;  %342 = vmatprep.mubr.f32.mxu1 %v251_v48  ;;  %v875_v62 = vpack.c.bf16 %v122_v58, %v121_v57  ;;  %v106_v0 = vld [vmem:[%s1348_s2 + $0x218] sm:$0xff]  ;;  %v124_v2 = vld [vmem:[%s1348_s2 + $0x2a8] sm:$0xff]  ;;  %v107_v4 = vld [vmem:[%s1348_s2 + $0x220] sm:$0xff] }
  0x1c   :  { %412 = vmatprep.mubr.f32.mxu0 %v253_v51  ;;  %v877_v5 = vpack.c.bf16 %v106_v0, %v105_v63  ;;  %v915_v6 = vld [vmem:[%s1346_s0 + $0x8] ss:$12 sps:$4 sm:$0xff]   ;;  %v879_v7 = vpack.c.bf16 %v124_v2, %v123_v1  ;;  %v916_v9 = vld [vmem:[%s1346_s0 + $0x20] ss:$12 sps:$4 sm:$0xff]  }
  0x1d   :  { %862 = vmatpush3.bf16.msra.mxu0 %v861_v28  ;;  %v108_v8 = vld [vmem:[%s1348_s2 + $0x228] sm:$0xff] }
  0x1e   :  { %864 = vmatprep.subr.bf16.mxu0 %v863_v30  ;;  %834 = vmatpush3.bf16.msra.mxu1 %v833_v34 }
  0x1f   :  { %836 = vmatprep.subr.bf16.mxu1 %v835_v38 }
  0x21   :  { %866 = vmatpush3.bf16.msra.mxu0 %v865_v44 }
  0x22   :  { %868 = vmatprep.subr.bf16.mxu0 %v867_v47  ;;  %838 = vmatpush3.bf16.msra.mxu1 %v837_v52 }
  0x23   :  { %872 = vmatprep.subr.bf16.mxu1 %v871_v53 }
  0x25   :  { %870 = vmatpush3.bf16.msra.mxu0 %v869_v56  ;;  %343 = vmatmul.mubr.f32.vlgmr.msra.gmra.mrb[0].mxu1 %v250_v59 }
  0x26   :  { %797 = vmatprep.subr.mxu0 %v941_v3  ;;  %874 = vmatpush3.bf16.msra.mxu1 %v873_v60 }
  0x27   :  { %876 = vmatprep.subr.bf16.mxu1 %v875_v62 }
  0x28   :  { %413 = vmatmul.mubr.f32.vlgmr.msra.gmra.mrb[2].mxu0 %v252_v61 }
  0x29   :  { %13 = vsyncpa [#allocation3], 0  ;;  %v125_v10 = vld [vmem:[%s1348_s2 + $0x2b0] sm:$0xff]  ;;  %v126_v11 = vld [vmem:[%s1348_s2 + $0x2b8] sm:$0xff]  ;;  %v262_v12 = vrot.slane %v915_v6, %v1166_v23  ;;  %799 = vmatprep.mubr.msk.f32.mxu0 %vm942_vm1, %v941_v3  ;;  %v269_v13 = vrot.slane %v916_v9, %v1166_v23  ;;  %v881_v14 = vpack.c.bf16 %v108_v8, %v107_v4  ;;  %v944_v46 = vmov 0  }
  0x2a   :  { %878 = vmatpush3.bf16.msra.mxu1 %v877_v5  ;;  %v883_v15 = vpack.c.bf16 %v126_v11, %v125_v10  ;;  %v109_v16 = vld [vmem:[%s1348_s2 + $0x230] sm:$0xff]  ;;  %v110_v17 = vld [vmem:[%s1348_s2 + $0x238] sm:$0xff]  ;;  %v127_v19 = vld [vmem:[%s1348_s2 + $0x2c0] sm:$0xff]  ;;  %908 = vset.pattern.permute.xlu0 %v944_v46  ;;  %vm506_vm3 = vcmask 261120   ;;  %vm660_vm5 = vcmask 57344  }
  0x2b   :  { %880 = vmatprep.subr.bf16.mxu1 %v879_v7  ;;  %v271_v18 = vcombine.high %v262_v12, %v269_v13  ;;  %v128_v20 = vld [vmem:[%s1348_s2 + $0x2c8] sm:$0xff]  ;;  %v885_v21 = vpack.c.bf16 %v110_v17, %v109_v16  ;;  %v111_v23 = vld [vmem:[%s1348_s2 + $0x240] sm:$0xff]  ;;  %v129_v25 = vld [vmem:[%s1348_s2 + $0x2d0] sm:$0xff]  ;;  %v270_v44 = vcombine.low %v262_v12, %v269_v13 }
  0x2c   :  { %v887_v22 = vpack.c.bf16 %v128_v20, %v127_v19  ;;  %v112_v24 = vld [vmem:[%s1348_s2 + $0x248] sm:$0xff]  ;;  %v130_v26 = vld [vmem:[%s1348_s2 + $0x2d8] sm:$0xff]  ;;  %v113_v29 = vld [vmem:[%s1348_s2 + $0x250] sm:$0xff] }
  0x2d   :  { %482 = vmatprep.mubr.f32.mxu1 %v271_v18  ;;  %v889_v27 = vpack.c.bf16 %v112_v24, %v111_v23  ;;  %v891_v28 = vpack.c.bf16 %v130_v26, %v129_v25  ;;  %v114_v30 = vld [vmem:[%s1348_s2 + $0x258] sm:$0xff]  ;;  %v131_v31 = vld [vmem:[%s1348_s2 + $0x2e0] sm:$0xff]  ;;  %v132_v32 = vld [vmem:[%s1348_s2 + $0x2e8] sm:$0xff] }
  0x2e   :  { %882 = vmatpush3.bf16.msra.mxu1 %v881_v14  ;;  %v893_v33 = vpack.c.bf16 %v114_v30, %v113_v29  ;;  %v895_v34 = vpack.c.bf16 %v132_v32, %v131_v31  ;;  %v115_v35 = vld [vmem:[%s1348_s2 + $0x260] sm:$0xff]  ;;  %v116_v36 = vld [vmem:[%s1348_s2 + $0x268] sm:$0xff]  ;;  %v133_v37 = vld [vmem:[%s1348_s2 + $0x2f0] sm:$0xff] }
  0x2f   :  { %884 = vmatprep.subr.bf16.mxu1 %v883_v15  ;;  %v134_v38 = vld [vmem:[%s1348_s2 + $0x2f8] sm:$0xff]  ;;  %v897_v39 = vpack.c.bf16 %v116_v36, %v115_v35  ;;  %v117_v41 = vld [vmem:[%s1348_s2 + $0x270] sm:$0xff]  ;;  %v500_v45 = vld [vmem:[%s1352_s6] sm:$0xff] }
  0x30   :  { %v899_v40 = vpack.c.bf16 %v134_v38, %v133_v37  ;;  %v118_v42 = vld [vmem:[%s1348_s2 + $0x278] sm:$0xff]  ;;  %503 = vperm.xlu0 %908, %v500_v45   ;;  %v677_v60 = vld [vmem:[%s1350_s4] ss:$0 sm:$0xff] }
  0x31   :  { %v901_v43 = vpack.c.bf16 %v118_v42, %v117_v41  ;;  %v499_v1 = vld [vmem:[%s1351_s5] sm:$0xff]  ;;  %s945_s5 = smov [#allocation2]  }
  0x32   :  { %886 = vmatpush3.bf16.msra.mxu1 %v885_v21  ;;  %v586_v8 = vld [vmem:[%s1353_s7] sm:$0x1]  ;;  %s668_s23 = sshll.u32 %s945_s5, 4  ;;  %s669_s23 = int_to_ptr.vmem [resolvable:$true] %s668_s23 }
  0x33   :  { %888 = vmatprep.subr.bf16.mxu1 %v887_v22  ;;  %s917_s24 = scalar_lea.vmem %s669_s23, 16  ;;  %s921_s25 = scalar_lea.vmem %s669_s23, 32 }
  0x34   :  { %p918_p0 = scmp.ne.s32.totalorder %s669_s23, %s917_s24  ;;  %p922_p1 = scmp.lt.s32.totalorder %s669_s23, %s669_s23 }
  0x35   :  { %p923_p2 = scmp.lt.s32.totalorder %s921_s25, %s917_s24 }
  0x36   :  { %890 = vmatpush3.bf16.msra.mxu1 %v889_v27 }
  0x37   :  { %892 = vmatprep.subr.bf16.mxu1 %v891_v28  ;;  %p924_p3 = por %p923_p2, %p922_p1 }
  0x39   :  { %p925_p4 = pnand %p924_p3, %p918_p0 }
  0x3a   :  { %894 = vmatpush3.bf16.msra.mxu1 %v893_v33 }
  0x3b   :  { %896 = vmatprep.subr.bf16.mxu1 %v895_v34 }
  0x3e   :  { %898 = vmatpush3.bf16.msra.mxu1 %v897_v39 }
  0x3f   :  { %900 = vmatprep.subr.bf16.mxu1 %v899_v40 }
  0x42   :  { %902 = vmatpush3.bf16.msra.mxu1 %v901_v43 }
  0x45   :  { %483 = vmatmul.mubr.f32.vlgmr.msra.gmra.mrb[2].mxu1 %v270_v44 }
  0xaf   :  { %v504_v2 = vpop.permute.xlu0 %503 }
  0xd9   :  { %v206_v47 = vpop.f32.mrb[0].mxu0 }
  0xda   :  { %v796_v48 = vpop.f32.mrb[1].mxu0 }
  0xf8   :  { %v715_v49 = vpop.f32.mrb[0].mxu1 }
  0xf9   :  { %v716_v50 = vpop.f32.mrb[1].mxu1 }
  0xfa   :  { %v717_v51 = vadd.f32 %v716_v50, %v715_v49 }
  0xfb   :  { %v750_v52 = vpop.f32.mrb[2].mxu0 }
  0xfc   :  { %v751_v53 = vpop.f32.mrb[3].mxu0  ;;  %v345_v54 = vadd.f32 %v717_v51, %v206_v47 }
  0xfd   :  { %v752_v55 = vadd.f32 %v751_v53, %v750_v52 }
  0xff   :  { %v415_v56 = vadd.f32 %v752_v55, %v345_v54 }
 0x118   :  { %v785_v57 = vpop.f32.mrb[2].mxu1 }
 0x119   :  { %v786_v58 = vpop.f32.mrb[3].mxu1 }
 0x11a   :  { %v787_v59 = vadd.f32 %v786_v58, %v785_v57 }
 0x11c   :  { %v485_v61 = vadd.f32 %v787_v59, %v415_v56 }
 0x11e   :  { %v495_v62 = vadd.f32 %v677_v60, %v485_v61 }
 0x120   :  { %v497_v63 = vmul.f32 0.01, %v495_v62  ;;  %vm496_vm2 = vcmp.gt.f32.partialorder %v495_v62, 0.0 }
 0x122   :  { %v498_v0 = vsel %vm496_vm2, %v495_v62, %v497_v63 }
 0x123   :  { %798 = vmatpush3.xpose.msk.msra.mxu0 %vm506_vm3, %v498_v0 }
 0x124   :  { %802 = vmatprep.subr.mxu0 %v941_v3 }
 0x126   :  { %800 = vmatmul.mubr.msk.f32.vlgmr.msra.gmra.mrb[4].mxu0 %vm506_vm3, %v499_v1 }
 0x127   :  { %804 = vmatprep.mubr.msk.f32.mxu0 %vm942_vm1, %v941_v3 }
 0x1f9   :  { %v579_v4 = vpop.f32.mrb[4].mxu0 }
 0x1fa   :  { %v580_v5 = vadd.f32 %v579_v4, %v504_v2  ;;  %v801_v6 = vpop.f32.mrb[5].mxu0 }
 0x1fc   :  { %vm583_vm4 = vcmp.gt.f32.partialorder %v580_v5, 0.0  ;;  %v584_v7 = vmul.f32 0.01, %v580_v5 }
 0x1fe   :  { %v585_v9 = vsel %vm583_vm4, %v580_v5, %v584_v7 }
 0x1ff   :  { %803 = vmatpush3.msra.mxu0 %v585_v9 }
 0x200   :  { %805 = vmatmul.mubr.msk.f32.vlgmr.msra.gmra.mrb[6].mxu0 %vm136_vm0, %v586_v8 }
 0x2d3   :  { %v656_v10 = vpop.f32.mrb[6].mxu0 }
 0x2d4   :  { %661 = vst.msk [vmem:[#allocation2] sm:$0x1] %vm660_vm5, %v656_v10  ;;  %v806_v3 = vpop.f32.mrb[7].mxu0 }
 0x2d5   :  { %928 = shalt.err (!%p925_p4)
}
 0x2d6   :  { %s929_s27 = scalar_lea.hbm %s1354_s8, 16 }
 0x2d7   :  { %p930_p5 = scmp.ne.s32.totalorder %s1354_s8, %s929_s27  ;;  %p933_p6 = scmp.lt.u32.totalorder %s929_s27, %s1354_s8 }
 0x2d9   :  { %p935_p7 = pnand %p933_p6, %p930_p5 }
 0x2db   :  { %938 = shalt.err (!%p935_p7)
}
 0x2dc   :  { %671 = dma.vmem_to_hbm [thread:$0]  %s669_s23, 16, %s1354_s8, [#allocation3]  }
 0x2dd   :  { %939 = dma.done.wait [#allocation3], 16  }
 0x2de   :  { %940 = vsyncadd [#allocation3], 4294967280 }
 0x2df   :  { %675 = vsyncpa [#allocation3], 1 }

</bundles_post_ra>
